<compile_context>
chip_gen: v6e
topology: v6e:2x2x1
jax: 0.10.0
libtpu: 0.0.40
codegen_flags: <defaults>
</compile_context>

<pallas_src>
import functools

import jax
import jax.numpy as jnp
from jax import lax
from jax.experimental import pallas as pl
from jax.experimental.pallas import tpu as pltpu


def _attn_kernel(x_ref, wqkv_ref, bqkv_ref, wo_ref, bo_ref, out_ref, attn_ref,
                 acc_ref, *, head_dim, scale):
    """One grid step = one (batch, head) pair.  All refs are VMEM-resident."""
    h = pl.program_id(1)
    d = head_dim
    cdt = x_ref.dtype          # MXU operand dtype (f32 or bf16); accum is f32.

    @pl.when(h == 0)
    def _():
        acc_ref[...] = jnp.zeros_like(acc_ref)

    x = x_ref[0]                                                     # (S, E)

    # Fused lane-dense per-head QKV projection: one (S,E)@(E,3D) MXU matmul
    # with f32 accumulation, then static lane slices for q / k / v.
    qkv = (jnp.dot(x, wqkv_ref[0], preferred_element_type=jnp.float32)
           + bqkv_ref[0])                                            # (S, 3D)
    q = (qkv[:, :d] * scale).astype(cdt)      # scale folded into q: (S,D) mul
    k = qkv[:, d:2 * d].astype(cdt)
    v = qkv[:, 2 * d:]

    # scores = q @ k^T contracting the last dims (no materialized transpose;
    # Mosaic drives the MXU with the rhs-transposed form directly).
    s = lax.dot_general(q, k, (((1,), (1,)), ((), ())),
                        preferred_element_type=jnp.float32)          # (S, S)

    # Numerically stable softmax along the key axis; one approx reciprocal per
    # row (EUP slot) + broadcast multiply.
    m = jnp.max(s, axis=-1, keepdims=True)
    e = jnp.exp(s - m)
    denom = jnp.sum(e, axis=-1, keepdims=True)
    p = e * pl.reciprocal(denom, approx=True)                        # (S, S)

    attn_ref[0, 0] = p.astype(attn_ref.dtype)

    # Context for this head and its output-projection contribution, added
    # straight into the cross-head f32 accumulator (no concat, no extra refs).
    ctx = jnp.dot(p.astype(cdt), v.astype(cdt),
                  preferred_element_type=jnp.float32)                # (S, D)
    acc_ref[...] += jnp.dot(ctx.astype(cdt), wo_ref[0],
                            preferred_element_type=jnp.float32)      # (S, E)

    @pl.when(h == pl.num_programs(1) - 1)
    def _():
        out_ref[0] = (acc_ref[...] + bo_ref[...]).astype(out_ref.dtype)


def prepare_params(params, n_head):
    """One-time re-layout of (E,E)/(1,E) params into the kernel layout."""
    E = params["wq"].shape[0]
    H = n_head
    D = E // H

    def heads_w(w):                        # (E, E) -> (H, E, D)
        return w.reshape(E, H, D).transpose(1, 0, 2)

    def heads_b(b):                        # (1, E) -> (H, 1, D)
        return b.reshape(H, D)[:, None, :]

    wqkv = jnp.concatenate(
        [heads_w(params["wq"]), heads_w(params["wk"]), heads_w(params["wv"])],
        axis=-1)                           # (H, E, 3D): fused per-head QKV
    bqkv = jnp.concatenate(
        [heads_b(params["bq"]), heads_b(params["bk"]), heads_b(params["bv"])],
        axis=-1)                           # (H, 1, 3D)
    wo = params["wo"].reshape(H, D, E)     # row (h*D + d) -> wo[h, d]
    bo = params["bo"]                      # (1, E)
    return {"wqkv": wqkv, "bqkv": bqkv, "wo": wo, "bo": bo}


def _round_up(v, m):
    return -(-v // m) * m


def _padded_vmem_bytes(shape, dtype):
    """Bytes one VMEM buffer of `shape` occupies after (sublane,lane) padding."""
    itemsize = jnp.dtype(dtype).itemsize
    dims = list(shape)
    dims[-1] = _round_up(dims[-1], 128)
    if len(dims) >= 2:
        dims[-2] = _round_up(dims[-2], 8 * max(1, 4 // itemsize))
    n = 1
    for dim in dims:
        n *= dim
    return n * itemsize


def self_attention(x, prep, n_head, *, attn_dtype=jnp.float32, mxu_dtype=None):
    """x: (B, S, E); prep: output of prepare_params(). Returns (out, attn)."""
    B, S, E = x.shape
    H = n_head
    D = E // H
    assert E % H == 0

    cdt = jnp.dtype(mxu_dtype) if mxu_dtype is not None else x.dtype
    x_c = x.astype(cdt)
    wqkv = prep["wqkv"].astype(cdt)
    bqkv = prep["bqkv"].astype(cdt)
    wo = prep["wo"].astype(cdt)
    bo = prep["bo"].astype(jnp.float32)    # added to the f32 accumulator

    kernel = functools.partial(_attn_kernel, head_dim=D, scale=D ** (-0.5))

    # Derive the scoped-VMEM budget from the actual blocks (double-buffered
    # in/out, single scratch) and cap it so the kernel stays inside v7x's
    # 64 MiB per-TensorCore VMEM (v5e/v6e have 128 MiB physical).
    resident = [
        ((1, S, E), cdt, 2),               # x block
        ((1, E, 3 * D), cdt, 2),           # wqkv block (changes every head)
        ((1, 1, 3 * D), cdt, 2),           # bqkv block
        ((1, D, E), cdt, 2),               # wo block
        ((1, E), jnp.float32, 2),          # bo block (count 2: conservative)
        ((1, S, E), x.dtype, 2),           # out block
        ((1, 1, S, S), attn_dtype, 2),     # attn block
        ((S, E), jnp.float32, 1),          # f32 accumulator scratch
    ]
    vmem_bytes = sum(_padded_vmem_bytes(shape, dt) * bufs
                     for shape, dt, bufs in resident)
    vmem_limit = max(8 * 1024 * 1024, int(vmem_bytes * 1.25) + (1 << 20))
    vmem_limit = min(vmem_limit, 56 * 1024 * 1024)

    cost = pl.CostEstimate(
        flops=B * (8 * S * E * E + 4 * H * S * S * D),
        transcendentals=B * H * S * S,
        bytes_accessed=(2 * B * S * E * x.dtype.itemsize
                        + B * H * S * S * jnp.dtype(attn_dtype).itemsize
                        + B * 4 * E * E * jnp.dtype(cdt).itemsize),
    )

    def build(single_buffer_bias):
        if single_buffer_bias:
            # Constant block index: staged once, never re-fetched -> 1 buffer.
            bo_spec = pl.BlockSpec((1, E), lambda b, h: (0, 0),
                                   pipeline_mode=pl.Buffered(buffer_count=1))
        else:
            bo_spec = pl.BlockSpec((1, E), lambda b, h: (0, 0))
        return pl.pallas_call(
            kernel,
            out_shape=(
                jax.ShapeDtypeStruct((B, S, E), x.dtype),         # output
                jax.ShapeDtypeStruct((B, H, S, S), attn_dtype),   # attn probs
            ),
            grid_spec=pltpu.PrefetchScalarGridSpec(
                num_scalar_prefetch=0,
                grid=(B, H),
                in_specs=[
                    pl.BlockSpec((1, S, E), lambda b, h: (b, 0, 0)),      # x
                    pl.BlockSpec((1, E, 3 * D), lambda b, h: (h, 0, 0)),  # wqkv
                    pl.BlockSpec((1, 1, 3 * D), lambda b, h: (h, 0, 0)),  # bqkv
                    pl.BlockSpec((1, D, E), lambda b, h: (h, 0, 0)),      # wo
                    bo_spec,                                              # bo
                ],
                out_specs=[
                    pl.BlockSpec((1, S, E), lambda b, h: (b, 0, 0)),
                    pl.BlockSpec((1, 1, S, S), lambda b, h: (b, h, 0, 0)),
                ],
                scratch_shapes=[pltpu.VMEM((S, E), jnp.float32)],
            ),
            compiler_params=pltpu.CompilerParams(
                dimension_semantics=("parallel", "arbitrary"),
                vmem_limit_bytes=vmem_limit,
            ),
            cost_estimate=cost,
        )

    args = (x_c, wqkv, bqkv, wo, bo)
    try:
        return build(True)(*args)
    except Exception:
        # pl.Buffered(1) is a newer feature; fall back to default buffering.
        return build(False)(*args)


def _reference(x, params, n_head):
    """Pure-JAX reference mirroring the PyTorch forward (dropout = identity)."""
    B, S, E = x.shape
    D = E // n_head
    scale = D ** (-0.5)

    def proj(w, b):
        return x @ w + b[0]

    q = proj(params["wq"], params["bq"]).reshape(B, S, n_head, D).transpose(0, 2, 1, 3)
    k = proj(params["wk"], params["bk"]).reshape(B, S, n_head, D).transpose(0, 2, 1, 3)
    v = proj(params["wv"], params["bv"]).reshape(B, S, n_head, D).transpose(0, 2, 1, 3)
    scores = jnp.einsum("bhqd,bhkd->bhqk", q, k) * scale
    attn = jax.nn.softmax(scores, axis=-1)
    out = jnp.einsum("bhqk,bhkd->bhqd", attn, v).transpose(0, 2, 1, 3).reshape(B, S, E)
    out = out @ params["wo"] + params["bo"][0]
    return out, attn


if __name__ == "__main__":
    B, S, E, n_head = 2, 8, 32, 4

    key = jax.random.PRNGKey(0)
    kx, kq, kk, kv, ko, kbq, kbk, kbv, kbo = jax.random.split(key, 9)

    x = jax.random.normal(kx, (B, S, E), dtype=jnp.float32)

    def lin_init(kw, kb):
        w = jax.random.normal(kw, (E, E), dtype=jnp.float32) * (E ** -0.5)
        b = jax.random.normal(kb, (1, E), dtype=jnp.float32) * 0.02
        return w, b

    params = {}
    params["wq"], params["bq"] = lin_init(kq, kbq)
    params["wk"], params["bk"] = lin_init(kk, kbk)
    params["wv"], params["bv"] = lin_init(kv, kbv)
    params["wo"], params["bo"] = lin_init(ko, kbo)

    prep = prepare_params(params, n_head)        # one-time weight re-layout
    ref_out, ref_attn = _reference(x, params, n_head)

    # f32 path (tolerances cover the EUP approx reciprocal in the softmax).
    out, attn = self_attention(x, prep, n_head)
    out, attn = jax.block_until_ready((out, attn))
    assert jnp.allclose(out, ref_out, atol=5e-2, rtol=3e-2)
    assert jnp.allclose(attn, ref_attn, atol=2e-2, rtol=2e-2)

    # Performance configuration: bf16 MXU operands + bf16 attention-prob
    # writeback (softmax math and accumulation stay f32 inside the kernel).
    out_bf, attn_bf = self_attention(x, prep, n_head,
                                     attn_dtype=jnp.bfloat16,
                                     mxu_dtype=jnp.bfloat16)
    out_bf, attn_bf = jax.block_until_ready((out_bf, attn_bf))
    assert jnp.allclose(out_bf, ref_out, atol=4e-1, rtol=1e-1)
    assert jnp.allclose(attn_bf.astype(jnp.float32), ref_attn,
                        atol=1.2e-1, rtol=1e-1)

    print("KERNEL_OK")
</pallas_src>

<mosaic_0001>
module attributes {stable_mosaic.version = 11 : i64} {
  func.func @_attn_kernel(%arg0: i32, %arg1: i32, %arg2: memref<1x8x32xf32, #tpu.memory_space<vmem>>, %arg3: memref<1x32x24xf32, #tpu.memory_space<vmem>>, %arg4: memref<1x1x24xf32, #tpu.memory_space<vmem>>, %arg5: memref<1x8x32xf32, #tpu.memory_space<vmem>>, %arg6: memref<1x32xf32, #tpu.memory_space<vmem>>, %arg7: memref<1x8x32xf32, #tpu.memory_space<vmem>>, %arg8: memref<1x1x8x8xf32, #tpu.memory_space<vmem>>, %arg9: memref<8x32xf32, #tpu.memory_space<vmem>>) attributes {dimension_semantics = [#tpu.dimension_semantics<parallel>, #tpu.dimension_semantics<arbitrary>], iteration_bounds = array<i64: 2, 4>, scalar_prefetch = 0 : i64, scratch_operands = 1 : i64, tpu.core_type = #tpu.core_type<tc>, window_params = [{transform_indices = @transform_0, window_bounds = array<i64: 1, 8, 32>}, {transform_indices = @transform_1, window_bounds = array<i64: 1, 32, 24>}, {transform_indices = @transform_2, window_bounds = array<i64: 1, 1, 24>}, {transform_indices = @transform_3, window_bounds = array<i64: 1, 8, 32>}, {pipeline_mode = #tpu.pipeline_mode<synchronous>, transform_indices = @transform_4, window_bounds = array<i64: 1, 32>}, {transform_indices = @transform_5, window_bounds = array<i64: 1, 8, 32>}, {transform_indices = @transform_6, window_bounds = array<i64: 1, 1, 8, 8>}]} {
    %c0_i32 = arith.constant 0 : i32
    %0 = arith.cmpi eq, %arg1, %c0_i32 : i32
    %1 = arith.extui %0 : i1 to i32
    %c0_i32_0 = arith.constant 0 : i32
    %2 = arith.cmpi ne, %1, %c0_i32_0 : i32
    scf.if %2 {
      %cst_27 = arith.constant 0.000000e+00 : f32
      %41 = vector.broadcast %cst_27 : f32 to vector<8x32xf32>
      %c0_28 = arith.constant 0 : index
      %c0_29 = arith.constant 0 : index
      %42 = vector.load %arg9[%c0_28, %c0_29] : memref<8x32xf32, #tpu.memory_space<vmem>>, vector<8x32xf32>
      tpu.vector_store %arg9[%c0_28, %c0_29], %41 {strides = array<i32>} : memref<8x32xf32, #tpu.memory_space<vmem>>, vector<8x32xf32>,
    } else {
    }
    %c0 = arith.constant 0 : index
    %c0_1 = arith.constant 0 : index
    %c0_2 = arith.constant 0 : index
    %3 = vector.load %arg2[%c0, %c0_1, %c0_2] : memref<1x8x32xf32, #tpu.memory_space<vmem>>, vector<1x8x32xf32>
    %4 = vector.shape_cast %3 : vector<1x8x32xf32> to vector<8x32xf32>
    %c0_3 = arith.constant 0 : index
    %c0_4 = arith.constant 0 : index
    %c0_5 = arith.constant 0 : index
    %5 = vector.load %arg3[%c0_3, %c0_4, %c0_5] : memref<1x32x24xf32, #tpu.memory_space<vmem>>, vector<1x32x24xf32>
    %6 = vector.shape_cast %5 : vector<1x32x24xf32> to vector<32x24xf32>
    %cst = arith.constant dense<0.000000e+00> : vector<8x24xf32>
    %7 = tpu.matmul %4, %6, %cst {dimension_numbers = #tpu.dot_dimension_numbers<[1], [0], [0], [1], [0, 0, 1, 1], [], []>} : vector<8x32xf32>, vector<32x24xf32>, vector<8x24xf32> -> vector<8x24xf32>
    %c0_6 = arith.constant 0 : index
    %c0_7 = arith.constant 0 : index
    %c0_8 = arith.constant 0 : index
    %8 = vector.load %arg4[%c0_6, %c0_7, %c0_8] : memref<1x1x24xf32, #tpu.memory_space<vmem>>, vector<1x1x24xf32>
    %9 = vector.shape_cast %8 : vector<1x1x24xf32> to vector<1x24xf32>
    %10 = vector.broadcast %9 : vector<1x24xf32> to vector<8x24xf32>
    %11 = arith.addf %7, %10 : vector<8x24xf32>
    %12 = vector.extract_strided_slice %11 {offsets = [0, 0], sizes = [8, 8], strides = [1, 1]} : vector<8x24xf32> to vector<8x8xf32>
    %cst_9 = arith.constant 0.353553385 : f32
    %13 = vector.broadcast %cst_9 : f32 to vector<8x8xf32>
    %14 = arith.mulf %12, %13 : vector<8x8xf32>
    %15 = vector.extract_strided_slice %11 {offsets = [0, 8], sizes = [8, 8], strides = [1, 1]} : vector<8x24xf32> to vector<8x8xf32>
    %16 = vector.extract_strided_slice %11 {offsets = [0, 16], sizes = [8, 8], strides = [1, 1]} : vector<8x24xf32> to vector<8x8xf32>
    %cst_10 = arith.constant dense<0.000000e+00> : vector<8x8xf32>
    %17 = tpu.matmul %14, %15, %cst_10 {dimension_numbers = #tpu.dot_dimension_numbers<[1], [1], [0], [0], [0, 0, 1, 0], [], []>} : vector<8x8xf32>, vector<8x8xf32>, vector<8x8xf32> -> vector<8x8xf32>
    %cst_11 = arith.constant dense<0xFF800000> : vector<8xf32>
    %18 = vector.multi_reduction <maximumf>, %17, %cst_11 [1] : vector<8x8xf32> to vector<8xf32>
    %19 = vector.shape_cast %18 : vector<8xf32> to vector<8x1xf32>
    %20 = vector.broadcast %19 : vector<8x1xf32> to vector<8x8xf32>
    %21 = arith.subf %17, %20 : vector<8x8xf32>
    %22 = math.exp %21 : vector<8x8xf32>
    %cst_12 = arith.constant dense<0.000000e+00> : vector<8xf32>
    %23 = vector.multi_reduction <add>, %22, %cst_12 [1] : vector<8x8xf32> to vector<8xf32>
    %24 = vector.shape_cast %23 : vector<8xf32> to vector<8x1xf32>
    %25 = tpu.reciprocal %24 {approx = true} : vector<8x1xf32> -> vector<8x1xf32>
    %26 = vector.broadcast %25 : vector<8x1xf32> to vector<8x8xf32>
    %27 = arith.mulf %22, %26 : vector<8x8xf32>
    %c0_13 = arith.constant 0 : index
    %c0_14 = arith.constant 0 : index
    %c0_15 = arith.constant 0 : index
    %c0_16 = arith.constant 0 : index
    %28 = vector.load %arg8[%c0_13, %c0_14, %c0_15, %c0_16] : memref<1x1x8x8xf32, #tpu.memory_space<vmem>>, vector<1x1x8x8xf32>
    %29 = vector.shape_cast %28 : vector<1x1x8x8xf32> to vector<8x8xf32>
    %30 = vector.shape_cast %27 : vector<8x8xf32> to vector<1x1x8x8xf32>
    tpu.vector_store %arg8[%c0_13, %c0_14, %c0_15, %c0_16], %30 {strides = array<i32>} : memref<1x1x8x8xf32, #tpu.memory_space<vmem>>, vector<1x1x8x8xf32>,
    %cst_17 = arith.constant dense<0.000000e+00> : vector<8x8xf32>
    %31 = tpu.matmul %27, %16, %cst_17 {dimension_numbers = #tpu.dot_dimension_numbers<[1], [0], [0], [1], [0, 0, 1, 1], [], []>} : vector<8x8xf32>, vector<8x8xf32>, vector<8x8xf32> -> vector<8x8xf32>
    %c0_18 = arith.constant 0 : index
    %c0_19 = arith.constant 0 : index
    %32 = vector.load %arg9[%c0_18, %c0_19] : memref<8x32xf32, #tpu.memory_space<vmem>>, vector<8x32xf32>
    %c0_20 = arith.constant 0 : index
    %c0_21 = arith.constant 0 : index
    %c0_22 = arith.constant 0 : index
    %33 = vector.load %arg5[%c0_20, %c0_21, %c0_22] : memref<1x8x32xf32, #tpu.memory_space<vmem>>, vector<1x8x32xf32>
    %34 = vector.shape_cast %33 : vector<1x8x32xf32> to vector<8x32xf32>
    %cst_23 = arith.constant dense<0.000000e+00> : vector<8x32xf32>
    %35 = tpu.matmul %31, %34, %cst_23 {dimension_numbers = #tpu.dot_dimension_numbers<[1], [0], [0], [1], [0, 0, 1, 1], [], []>} : vector<8x8xf32>, vector<8x32xf32>, vector<8x32xf32> -> vector<8x32xf32>
    %36 = arith.addf %32, %35 : vector<8x32xf32>
    %c0_24 = arith.constant 0 : index
    %c0_25 = arith.constant 0 : index
    %37 = vector.load %arg9[%c0_24, %c0_25] : memref<8x32xf32, #tpu.memory_space<vmem>>, vector<8x32xf32>
    tpu.vector_store %arg9[%c0_24, %c0_25], %36 {strides = array<i32>} : memref<8x32xf32, #tpu.memory_space<vmem>>, vector<8x32xf32>,
    %c3_i32 = arith.constant 3 : i32
    %38 = arith.cmpi eq, %arg1, %c3_i32 : i32
    %39 = arith.extui %38 : i1 to i32
    %c0_i32_26 = arith.constant 0 : i32
    %40 = arith.cmpi ne, %39, %c0_i32_26 : i32
    scf.if %40 {
      %c0_27 = arith.constant 0 : index
      %c0_28 = arith.constant 0 : index
      %41 = vector.load %arg9[%c0_27, %c0_28] : memref<8x32xf32, #tpu.memory_space<vmem>>, vector<8x32xf32>
      %c0_29 = arith.constant 0 : index
      %c0_30 = arith.constant 0 : index
      %42 = vector.load %arg6[%c0_29, %c0_30] : memref<1x32xf32, #tpu.memory_space<vmem>>, vector<1x32xf32>
      %43 = vector.broadcast %42 : vector<1x32xf32> to vector<8x32xf32>
      %44 = arith.addf %41, %43 : vector<8x32xf32>
      %c0_31 = arith.constant 0 : index
      %c0_32 = arith.constant 0 : index
      %c0_33 = arith.constant 0 : index
      %45 = vector.load %arg7[%c0_31, %c0_32, %c0_33] : memref<1x8x32xf32, #tpu.memory_space<vmem>>, vector<1x8x32xf32>
      %46 = vector.shape_cast %45 : vector<1x8x32xf32> to vector<8x32xf32>
      %47 = vector.shape_cast %44 : vector<8x32xf32> to vector<1x8x32xf32>
      tpu.vector_store %arg7[%c0_31, %c0_32, %c0_33], %47 {strides = array<i32>} : memref<1x8x32xf32, #tpu.memory_space<vmem>>, vector<1x8x32xf32>,
    } else {
    }
    return
  }
  func.func @transform_0(%arg0: i32, %arg1: i32) -> (i32, i32, i32) {
    %c0_i32 = arith.constant 0 : i32
    %c0_i32_0 = arith.constant 0 : i32
    %c0_i32_1 = arith.constant 0 : i32
    return %arg0, %c0_i32, %c0_i32_0 : i32, i32, i32
  }
  func.func @transform_1(%arg0: i32, %arg1: i32) -> (i32, i32, i32) {
    %c0_i32 = arith.constant 0 : i32
    %c0_i32_0 = arith.constant 0 : i32
    %c0_i32_1 = arith.constant 0 : i32
    return %arg1, %c0_i32, %c0_i32_0 : i32, i32, i32
  }
  func.func @transform_2(%arg0: i32, %arg1: i32) -> (i32, i32, i32) {
    %c0_i32 = arith.constant 0 : i32
    %c0_i32_0 = arith.constant 0 : i32
    %c0_i32_1 = arith.constant 0 : i32
    return %arg1, %c0_i32, %c0_i32_0 : i32, i32, i32
  }
  func.func @transform_3(%arg0: i32, %arg1: i32) -> (i32, i32, i32) {
    %c0_i32 = arith.constant 0 : i32
    %c0_i32_0 = arith.constant 0 : i32
    %c0_i32_1 = arith.constant 0 : i32
    return %arg1, %c0_i32, %c0_i32_0 : i32, i32, i32
  }
  func.func @transform_4(%arg0: i32, %arg1: i32) -> (i32, i32) {
    %c0_i32 = arith.constant 0 : i32
    %c0_i32_0 = arith.constant 0 : i32
    %c0_i32_1 = arith.constant 0 : i32
    return %c0_i32, %c0_i32_0 : i32, i32
  }
  func.func @transform_5(%arg0: i32, %arg1: i32) -> (i32, i32, i32) {
    %c0_i32 = arith.constant 0 : i32
    %c0_i32_0 = arith.constant 0 : i32
    %c0_i32_1 = arith.constant 0 : i32
    return %arg0, %c0_i32, %c0_i32_0 : i32, i32, i32
  }
  func.func @transform_6(%arg0: i32, %arg1: i32) -> (i32, i32, i32, i32) {
    %c0_i32 = arith.constant 0 : i32
    %c0_i32_0 = arith.constant 0 : i32
    %c0_i32_1 = arith.constant 0 : i32
    return %arg0, %arg1, %c0_i32, %c0_i32_0 : i32, i32, i32, i32
  }
}

module attributes {stable_mosaic.version = 11 : i64} {
  func.func @_attn_kernel(%arg0: i32, %arg1: i32, %arg2: memref<1x8x32xf32, #tpu.memory_space<vmem>>, %arg3: memref<1x32x24xf32, #tpu.memory_space<vmem>>, %arg4: memref<1x1x24xf32, #tpu.memory_space<vmem>>, %arg5: memref<1x8x32xf32, #tpu.memory_space<vmem>>, %arg6: memref<1x32xf32, #tpu.memory_space<vmem>>, %arg7: memref<1x8x32xf32, #tpu.memory_space<vmem>>, %arg8: memref<1x1x8x8xf32, #tpu.memory_space<vmem>>, %arg9: memref<8x32xf32, #tpu.memory_space<vmem>>) attributes {dimension_semantics = [#tpu.dimension_semantics<parallel>, #tpu.dimension_semantics<arbitrary>], iteration_bounds = array<i64: 2, 4>, scalar_prefetch = 0 : i64, scratch_operands = 1 : i64, tpu.core_type = #tpu.core_type<tc>, window_params = [{transform_indices = @transform_0, window_bounds = array<i64: 1, 8, 32>}, {transform_indices = @transform_1, window_bounds = array<i64: 1, 32, 24>}, {transform_indices = @transform_2, window_bounds = array<i64: 1, 1, 24>}, {transform_indices = @transform_3, window_bounds = array<i64: 1, 8, 32>}, {pipeline_mode = #tpu.pipeline_mode<synchronous>, transform_indices = @transform_4, window_bounds = array<i64: 1, 32>}, {transform_indices = @transform_5, window_bounds = array<i64: 1, 8, 32>}, {transform_indices = @transform_6, window_bounds = array<i64: 1, 1, 8, 8>}]} {
    %c0_i32 = arith.constant 0 : i32
    %0 = arith.cmpi eq, %arg1, %c0_i32 : i32
    %1 = arith.extui %0 : i1 to i32
    %c0_i32_0 = arith.constant 0 : i32
    %2 = arith.cmpi ne, %1, %c0_i32_0 : i32
    scf.if %2 {
      %cst_27 = arith.constant 0.000000e+00 : f32
      %41 = vector.broadcast %cst_27 : f32 to vector<8x32xf32>
      %c0_28 = arith.constant 0 : index
      %c0_29 = arith.constant 0 : index
      %42 = vector.load %arg9[%c0_28, %c0_29] : memref<8x32xf32, #tpu.memory_space<vmem>>, vector<8x32xf32>
      tpu.vector_store %arg9[%c0_28, %c0_29], %41 {strides = array<i32>} : memref<8x32xf32, #tpu.memory_space<vmem>>, vector<8x32xf32>,
    } else {
    }
    %c0 = arith.constant 0 : index
    %c0_1 = arith.constant 0 : index
    %c0_2 = arith.constant 0 : index
    %3 = vector.load %arg2[%c0, %c0_1, %c0_2] : memref<1x8x32xf32, #tpu.memory_space<vmem>>, vector<1x8x32xf32>
    %4 = vector.shape_cast %3 : vector<1x8x32xf32> to vector<8x32xf32>
    %c0_3 = arith.constant 0 : index
    %c0_4 = arith.constant 0 : index
    %c0_5 = arith.constant 0 : index
    %5 = vector.load %arg3[%c0_3, %c0_4, %c0_5] : memref<1x32x24xf32, #tpu.memory_space<vmem>>, vector<1x32x24xf32>
    %6 = vector.shape_cast %5 : vector<1x32x24xf32> to vector<32x24xf32>
    %cst = arith.constant dense<0.000000e+00> : vector<8x24xf32>
    %7 = tpu.matmul %4, %6, %cst {dimension_numbers = #tpu.dot_dimension_numbers<[1], [0], [0], [1], [0, 0, 1, 1], [], []>} : vector<8x32xf32>, vector<32x24xf32>, vector<8x24xf32> -> vector<8x24xf32>
    %c0_6 = arith.constant 0 : index
    %c0_7 = arith.constant 0 : index
    %c0_8 = arith.constant 0 : index
    %8 = vector.load %arg4[%c0_6, %c0_7, %c0_8] : memref<1x1x24xf32, #tpu.memory_space<vmem>>, vector<1x1x24xf32>
    %9 = vector.shape_cast %8 : vector<1x1x24xf32> to vector<1x24xf32>
    %10 = vector.broadcast %9 : vector<1x24xf32> to vector<8x24xf32>
    %11 = arith.addf %7, %10 : vector<8x24xf32>
    %12 = vector.extract_strided_slice %11 {offsets = [0, 0], sizes = [8, 8], strides = [1, 1]} : vector<8x24xf32> to vector<8x8xf32>
    %cst_9 = arith.constant 0.353553385 : f32
    %13 = vector.broadcast %cst_9 : f32 to vector<8x8xf32>
    %14 = arith.mulf %12, %13 : vector<8x8xf32>
    %15 = vector.extract_strided_slice %11 {offsets = [0, 8], sizes = [8, 8], strides = [1, 1]} : vector<8x24xf32> to vector<8x8xf32>
    %16 = vector.extract_strided_slice %11 {offsets = [0, 16], sizes = [8, 8], strides = [1, 1]} : vector<8x24xf32> to vector<8x8xf32>
    %cst_10 = arith.constant dense<0.000000e+00> : vector<8x8xf32>
    %17 = tpu.matmul %14, %15, %cst_10 {dimension_numbers = #tpu.dot_dimension_numbers<[1], [1], [0], [0], [0, 0, 1, 0], [], []>} : vector<8x8xf32>, vector<8x8xf32>, vector<8x8xf32> -> vector<8x8xf32>
    %cst_11 = arith.constant dense<0xFF800000> : vector<8xf32>
    %18 = vector.multi_reduction <maximumf>, %17, %cst_11 [1] : vector<8x8xf32> to vector<8xf32>
    %19 = vector.shape_cast %18 : vector<8xf32> to vector<8x1xf32>
    %20 = vector.broadcast %19 : vector<8x1xf32> to vector<8x8xf32>
    %21 = arith.subf %17, %20 : vector<8x8xf32>
    %22 = math.exp %21 : vector<8x8xf32>
    %cst_12 = arith.constant dense<0.000000e+00> : vector<8xf32>
    %23 = vector.multi_reduction <add>, %22, %cst_12 [1] : vector<8x8xf32> to vector<8xf32>
    %24 = vector.shape_cast %23 : vector<8xf32> to vector<8x1xf32>
    %25 = tpu.reciprocal %24 {approx = true} : vector<8x1xf32> -> vector<8x1xf32>
    %26 = vector.broadcast %25 : vector<8x1xf32> to vector<8x8xf32>
    %27 = arith.mulf %22, %26 : vector<8x8xf32>
    %c0_13 = arith.constant 0 : index
    %c0_14 = arith.constant 0 : index
    %c0_15 = arith.constant 0 : index
    %c0_16 = arith.constant 0 : index
    %28 = vector.load %arg8[%c0_13, %c0_14, %c0_15, %c0_16] : memref<1x1x8x8xf32, #tpu.memory_space<vmem>>, vector<1x1x8x8xf32>
    %29 = vector.shape_cast %28 : vector<1x1x8x8xf32> to vector<8x8xf32>
    %30 = vector.shape_cast %27 : vector<8x8xf32> to vector<1x1x8x8xf32>
    tpu.vector_store %arg8[%c0_13, %c0_14, %c0_15, %c0_16], %30 {strides = array<i32>} : memref<1x1x8x8xf32, #tpu.memory_space<vmem>>, vector<1x1x8x8xf32>,
    %cst_17 = arith.constant dense<0.000000e+00> : vector<8x8xf32>
    %31 = tpu.matmul %27, %16, %cst_17 {dimension_numbers = #tpu.dot_dimension_numbers<[1], [0], [0], [1], [0, 0, 1, 1], [], []>} : vector<8x8xf32>, vector<8x8xf32>, vector<8x8xf32> -> vector<8x8xf32>
    %c0_18 = arith.constant 0 : index
    %c0_19 = arith.constant 0 : index
    %32 = vector.load %arg9[%c0_18, %c0_19] : memref<8x32xf32, #tpu.memory_space<vmem>>, vector<8x32xf32>
    %c0_20 = arith.constant 0 : index
    %c0_21 = arith.constant 0 : index
    %c0_22 = arith.constant 0 : index
    %33 = vector.load %arg5[%c0_20, %c0_21, %c0_22] : memref<1x8x32xf32, #tpu.memory_space<vmem>>, vector<1x8x32xf32>
    %34 = vector.shape_cast %33 : vector<1x8x32xf32> to vector<8x32xf32>
    %cst_23 = arith.constant dense<0.000000e+00> : vector<8x32xf32>
    %35 = tpu.matmul %31, %34, %cst_23 {dimension_numbers = #tpu.dot_dimension_numbers<[1], [0], [0], [1], [0, 0, 1, 1], [], []>} : vector<8x8xf32>, vector<8x32xf32>, vector<8x32xf32> -> vector<8x32xf32>
    %36 = arith.addf %32, %35 : vector<8x32xf32>
    %c0_24 = arith.constant 0 : index
    %c0_25 = arith.constant 0 : index
    %37 = vector.load %arg9[%c0_24, %c0_25] : memref<8x32xf32, #tpu.memory_space<vmem>>, vector<8x32xf32>
    tpu.vector_store %arg9[%c0_24, %c0_25], %36 {strides = array<i32>} : memref<8x32xf32, #tpu.memory_space<vmem>>, vector<8x32xf32>,
    %c3_i32 = arith.constant 3 : i32
    %38 = arith.cmpi eq, %arg1, %c3_i32 : i32
    %39 = arith.extui %38 : i1 to i32
    %c0_i32_26 = arith.constant 0 : i32
    %40 = arith.cmpi ne, %39, %c0_i32_26 : i32
    scf.if %40 {
      %c0_27 = arith.constant 0 : index
      %c0_28 = arith.constant 0 : index
      %41 = vector.load %arg9[%c0_27, %c0_28] : memref<8x32xf32, #tpu.memory_space<vmem>>, vector<8x32xf32>
      %c0_29 = arith.constant 0 : index
      %c0_30 = arith.constant 0 : index
      %42 = vector.load %arg6[%c0_29, %c0_30] : memref<1x32xf32, #tpu.memory_space<vmem>>, vector<1x32xf32>
      %43 = vector.broadcast %42 : vector<1x32xf32> to vector<8x32xf32>
      %44 = arith.addf %41, %43 : vector<8x32xf32>
      %c0_31 = arith.constant 0 : index
      %c0_32 = arith.constant 0 : index
      %c0_33 = arith.constant 0 : index
      %45 = vector.load %arg7[%c0_31, %c0_32, %c0_33] : memref<1x8x32xf32, #tpu.memory_space<vmem>>, vector<1x8x32xf32>
      %46 = vector.shape_cast %45 : vector<1x8x32xf32> to vector<8x32xf32>
      %47 = vector.shape_cast %44 : vector<8x32xf32> to vector<1x8x32xf32>
      tpu.vector_store %arg7[%c0_31, %c0_32, %c0_33], %47 {strides = array<i32>} : memref<1x8x32xf32, #tpu.memory_space<vmem>>, vector<1x8x32xf32>,
    } else {
    }
    return
  }
  func.func @transform_0(%arg0: i32, %arg1: i32) -> (i32, i32, i32) {
    %c0_i32 = arith.constant 0 : i32
    %c0_i32_0 = arith.constant 0 : i32
    %c0_i32_1 = arith.constant 0 : i32
    return %arg0, %c0_i32, %c0_i32_0 : i32, i32, i32
  }
  func.func @transform_1(%arg0: i32, %arg1: i32) -> (i32, i32, i32) {
    %c0_i32 = arith.constant 0 : i32
    %c0_i32_0 = arith.constant 0 : i32
    %c0_i32_1 = arith.constant 0 : i32
    return %arg1, %c0_i32, %c0_i32_0 : i32, i32, i32
  }
  func.func @transform_2(%arg0: i32, %arg1: i32) -> (i32, i32, i32) {
    %c0_i32 = arith.constant 0 : i32
    %c0_i32_0 = arith.constant 0 : i32
    %c0_i32_1 = arith.constant 0 : i32
    return %arg1, %c0_i32, %c0_i32_0 : i32, i32, i32
  }
  func.func @transform_3(%arg0: i32, %arg1: i32) -> (i32, i32, i32) {
    %c0_i32 = arith.constant 0 : i32
    %c0_i32_0 = arith.constant 0 : i32
    %c0_i32_1 = arith.constant 0 : i32
    return %arg1, %c0_i32, %c0_i32_0 : i32, i32, i32
  }
  func.func @transform_4(%arg0: i32, %arg1: i32) -> (i32, i32) {
    %c0_i32 = arith.constant 0 : i32
    %c0_i32_0 = arith.constant 0 : i32
    %c0_i32_1 = arith.constant 0 : i32
    return %c0_i32, %c0_i32_0 : i32, i32
  }
  func.func @transform_5(%arg0: i32, %arg1: i32) -> (i32, i32, i32) {
    %c0_i32 = arith.constant 0 : i32
    %c0_i32_0 = arith.constant 0 : i32
    %c0_i32_1 = arith.constant 0 : i32
    return %arg0, %c0_i32, %c0_i32_0 : i32, i32, i32
  }
  func.func @transform_6(%arg0: i32, %arg1: i32) -> (i32, i32, i32, i32) {
    %c0_i32 = arith.constant 0 : i32
    %c0_i32_0 = arith.constant 0 : i32
    %c0_i32_1 = arith.constant 0 : i32
    return %arg0, %arg1, %c0_i32, %c0_i32_0 : i32, i32, i32, i32
  }
}

</mosaic_0001>

<bundles_post_ra>
// kernel: tpu_custom_call.1
= control target key start
LH: loop header
LB: loop body
LE: loop exit
PB: predicated region body
PF: predicated region fallthrough
CT: control target
= control target key end

     0   :  { %s1472_s0 = inlined_call_operand.vmem [shape: f32[2,8,32], index: 0, kind: input, shape index: {}]   ;;  %s1473_s1 = inlined_call_operand.vmem [shape: f32[4,32,24], index: 1, kind: input, shape index: {}]   ;;  %s1474_s2 = inlined_call_operand.vmem [shape: f32[4,1,24], index: 2, kind: input, shape index: {}]   ;;  %s1475_s3 = inlined_call_operand.vmem [shape: f32[4,8,32], index: 3, kind: input, shape index: {}]   ;;  %s1476_s4 = inlined_call_operand.vmem [shape: f32[1,32], index: 4, kind: input, shape index: {}]   ;;  %s1477_s5 = inlined_call_operand.hbm [shape: f32[2,8,32], index: 5, kind: output, shape index: {0}]   ;;  %s1478_s6 = inlined_call_operand.hbm [shape: f32[2,4,8,8], index: 6, kind: output, shape index: {1}]  }
   0x1   :  { %1496 = sst [smem:[#allocation23_spill]] %s1478_s6 }
   0x2   :  { %12 = vsyncpa [#allocation4], 0 }
   0x3   :  { %14 = vsyncpa [#allocation4 + $0x1], 0 }
   0x4   :  { %15 = vsyncpa [#allocation6], 0 }
   0x5   :  { %17 = vsyncpa [#allocation6 + $0x1], 0  ;;  %s1209_s21 = smov 0   ;;  %s1211_s22 = smov 0  }
   0x6   :  { %s1213_s23 = smov 0   ;;  %s1215_s24 = smov 0  }
   0x7   :  { %s1217_s25 = smov 0   ;;  %s1219_s26 = smov 0  }
   0x8   :  { %s1221_s27 = smov 0   ;;  %s1223_s28 = smov 0  }
   0x9   :  { %s1225_s29 = smov 0   ;;  %s1227_s30 = smov 0  }
   0xa   :  { %s1229_s7 = smov 0  }
   0xb LB: > { %1497 = sst [smem:[#allocation9_spill]] %s1125_s21  ;;  %s845_s8 = sadd.s32 4294967295, %s1165_s7   ;;  %s1165_s7 = sphi %s1229_s7, %s23_s7   ;;  %s1161_s30 = sphi %s1227_s30, %s1535_s30   ;;  %s1157_s29 = sphi %s1225_s29, %s1534_s29   ;;  %s1153_s28 = sphi %s1223_s28, %s1533_s28   ;;  %s1149_s27 = sphi %s1221_s27, %s1532_s27   ;;  %s1145_s26 = sphi %s1219_s26, %s1531_s26   ;;  %s1141_s25 = sphi %s1217_s25, %s1540_s25   ;;  %s1137_s24 = sphi %s1215_s24, %s1539_s24   ;;  %s1133_s23 = sphi %s1213_s23, %s1538_s23   ;;  %s1129_s22 = sphi %s1211_s22, %s1537_s22   ;;  %s1125_s21 = sphi %s1209_s21, %s1536_s21  }
   0xc   : > { %1498 = sst [smem:[#allocation10_spill]] %s1133_s23  ;;  %s846_s9 = sadd.s32 4294967294, %s1165_s7  }
   0xd   : > { %1499 = sst [smem:[#allocation11_spill]] %s1137_s24  ;;  %s32_s10 = sadd.s32 1, %s1157_s29 }
   0xe   : > { %1500 = sst [smem:[#allocation12_spill]] %s1145_s26  ;;  %s35_s11 = sadd.s32 1, %s1161_s30 }
   0xf   : > { %1501 = sst [smem:[#allocation13_spill]] %s1157_s29  ;;  %p33_p0 = scmp.ge.s32.totalorder %s32_s10, 4 }
  0x10   : > { %1502 = sst [smem:[#allocation14_spill]] %s1161_s30  ;;  %s167_s12 = sadd.s32 1, %s1145_s26 }
  0x11   : > { %1503 = sst [smem:[#allocation15_spill]] %s1165_s7  ;;  %p177_p1 = scmp.ne.s32.totalorder %s1145_s26, %s1141_s25 }
  0x12   : > { %p1271_p2 = scmp.eq.s32.totalorder %s845_s8, 7  ;;  %s1542_s10 = smov (%p33_p0, %s32_s10), 0 }
  0x13   : > { %1505 = sst [smem:[#allocation16_spill]] %s1542_s10  ;;  %s1544_s11 = smov (!%p33_p0, %s35_s11), %s1161_s30 }
  0x14   : > { %p1280_p3 = por %p1271_p2, %p177_p1  ;;  %p183_p4 = scmp.ne.s32.totalorder %s1141_s25, %s1137_s24 }
  0x15   : > { %p37_p5 = scmp.ge.s32.totalorder %s1544_s11, 2  ;;  %p1286_p6 = scmp.eq.s32.totalorder %s846_s9, 7 }
  0x16   : > { %s191_s16 = ssub.s32 %s1157_s29, %s1542_s10  ;;  %s195_s17 = sadd.s32 1, %s1133_s23 }
  0x17   : > { %s1546_s11 = smov (%p37_p5, %s1544_s11), 0  ;;  %p1297_p7 = por %p1286_p6, %p183_p4 }
  0x18   : > { %1508 = sst [smem:[#allocation17_spill]] %s1546_s11  ;;  %p205_p8 = scmp.ne.s32.totalorder %s1133_s23, %s1129_s22 }
  0x19   : > { %s1509_s18 = scalar_select %p1297_p7, 1, 0 }
  0x1a   : > { %s164_s19 = ssub.s32 %s1161_s30, %s1546_s11  ;;  %p211_p9 = scmp.ne.s32.totalorder %s1129_s22, %s1125_s21 }
  0x1b   : > { %1510 = sst [smem:[#allocation18_spill]] %s1509_s18  ;;  %p165_p10 = scmp.eq.s32.totalorder %s164_s19, 0 }
  0x1c   : > { %s192_s20 = sor.u32 %s191_s16, %s164_s19  ;;  %p1309_p12 = por %p205_p8, %p1271_p2 }
  0x1d   : > { %p193_p11 = scmp.eq.s32.totalorder %s192_s20, 0  ;;  %p1321_p13 = por %p211_p9, %p1286_p6 }
  0x1e   : > { %s1511_s8 = scalar_select %p1309_p12, 1, 0 }
  0x1f   : > { %s1314_s9 = scalar_select %p165_p10, %s1145_s26, %s167_s12  }
  0x20   : > { %1512 = sst [smem:[#allocation19_spill]] %s1511_s8  ;;  %p849_p0 = scmp.ge.s32.totalorder %s1165_s7, 1 }
  0x21   : > { %1513 = sst [smem:[#allocation20_spill]] %s1314_s9  ;;  %p261_p1 = scmp.lt.s32.totalorder %s1165_s7, 9 }
  0x22   : > { %s1317_s10 = scalar_select %p193_p11, %s1133_s23, %s195_s17  }
  0x23   : > { %s1515_s29 = scalar_select %p1321_p13, 1, 0 }
  0x24   : > { %1514 = sst [smem:[#allocation21_spill]] %s1317_s10  ;;  %p262_p4 = pnand %p849_p0, %p261_p1 }
  0x25   : > { %1516 = sst [smem:[#allocation22_spill]] %s1515_s29  ;;  %s1483_s12 = sand.u32 (!%p262_p4), 1, %s1141_s25  }
  0x26   : > { %265 = sbr.rel (%p262_p4) target bundleno = 1331 (0x533), region = 40  ;;  %s1485_s13 = sand.u32 (!%p262_p4), 1, %s1129_s22  }
  0x27   : > { %s1331_s15 = sshll.u32 (!%p262_p4), %s1483_s12, 3  ;;  %s1335_s16 = sshll.u32 (!%p262_p4), %s1485_s13, 3 }
  0x28   : > { %p307_p2 = scmp.lt.s32.totalorder (!%p262_p4), %s1153_s28, 1  ;;  %p311_p5 = scmp.lt.s32.totalorder (!%p262_p4), %s1149_s27, 3 }
  0x29   : > { %s306_s8 = scalar_lea.vmem (!%p262_p4), [#allocation5], %s1335_s16  ;;  %p856_p6 = scmp.ne.s32.totalorder (!%p262_p4), %s1149_s27, 0 }
  0x2b   : > { %s308_s17 = scalar_select %p307_p2, %s1153_s28, 1 }
  0x2c   : > { %s1341_s19 = scalar_select %p311_p5, %s1149_s27, 3 }
  0x2d   : > { %s852_s20 = sshll.u32 %s308_s17, 3  ;;  %s299_s17 = scalar_lea.vmem [#allocation3], %s1331_s15 }
  0x2e   : > { %s310_s9 = scalar_lea.vmem %s1472_s0, %s852_s20  ;;  %s872_s12 = sshll.u32 %s1341_s19, 5 }
  0x2f   : > { %s315_s13 = scalar_lea.vmem %s1473_s1, %s872_s12  ;;  %s318_s21 = scalar_lea.vmem %s1474_s2, %s1341_s19 }
  0x30   : > { %s855_s18 = sshll.u32 %s1341_s19, 3  ;;  %326 = sbr.rel (%p856_p6) target bundleno = 55 (0x37), region = 44 }
  0x31   : > { %s1358_s6 = scalar_lea.vmem %s1475_s3, %s855_s18 }
  0x35   : > { %vm327_vm0 = vcmask 261120   ;;  %v1167_v0 = vmov 0.0  }
  0x36   : > { %328 = vst.msk [vmem:[#allocation2] sm:$0xff] %vm327_vm0, %v1167_v0 }
  0x37 PF: > { %v333_v1 = vld [vmem:[%s315_s13 + $0x18] sm:$0xff]  ;;  %v1168_v2 = vmov 0.0   ;;  %v332_v3 = vld [vmem:[%s315_s13 + $0x10] sm:$0xff]  ;;  %vm1169_vm1 = vmmov 0   ;;  %v331_v4 = vld [vmem:[%s315_s13 + $0x8] sm:$0xff]  ;;  %vm341_vm2 = vcmask 261120  }
  0x38   : > { %884 = vmatprep.subr.mxu0 %v1168_v2  ;;  %892 = vmatprep.mubr.msk.f32.mxu0 %vm1169_vm1, %v1168_v2  ;;  %v330_v5 = vld [vmem:[%s315_s13] sm:$0xff]  ;;  %s1170_s26 = smov 120   ;;  %vm419_vm3 = vcmask 64512   ;;  %p863_p8 = scmp.ne.s32.totalorder %s1149_s27, 3 }
  0x39   : > { %885 = vmatpush3.msra.mxu0 %v333_v1  ;;  %895 = vmatprep.subr.mxu1 %v1168_v2  ;;  %v329_v6 = vld [vmem:[%s310_s9] sm:$0xff] }
  0x3a   : > { %886 = vmatprep.subr.mxu0 %v1168_v2  ;;  %897 = vmatprep.mubr.msk.f32.mxu1 %vm1169_vm1, %v1168_v2  ;;  %v857_v7 = vld [vmem:[%s318_s21] ss:$0 sm:$0xff]  ;;  %s1171_s21 = smov 112  }
  0x3b   : > { %887 = vmatpush3.msra.mxu0 %v332_v3  ;;  %v584_v21 = vld [vmem:[%s1358_s6] sm:$0xff] }
  0x3c   : > { %888 = vmatprep.subr.mxu0 %v1168_v2 }
  0x3d   : > { %889 = vmatpush3.msra.mxu0 %v331_v4  ;;  %v583_v28 = vld [vmem:[#allocation2] sm:$0xff] }
  0x3e   : > { %890 = vmatprep.subr.mxu0 %v1168_v2 }
  0x3f   : > { %891 = vmatpush3.msra.mxu0 %v330_v5 }
  0x40   : > { %893 = vmatmul.mubr.msk.f32.vlgmr.msra.gmra.mxu0 %vm341_vm2, %v329_v6  ;;  %905 = vmatprep.subr.mxu0 %v1168_v2 }
  0x41   : > { %907 = vmatprep.mubr.msk.f32.mxu0 %vm1169_vm1, %v1168_v2  ;;  %906 = vmatpush3.msra.mxu0 %v584_v21 }
 0x100   : > { %v411_v8 = vpop.f32.mrf.mxu0 }
 0x101   : > { %v412_v9 = vadd.f32 %v857_v7, %v411_v8 }
 0x102   : > { %v894_v10 = vpop.f32.mrf.mxu0 }
 0x103   : > { %417 = vrot.lane.b32.xlu0 %v412_v9, %s1170_s26  ;;  %v415_v12 = vmul.f32 0.35355338, %v412_v9 }
 0x175   : > { %v418_v11 = vpop.permute.xlu0 %417 }
 0x176   : > { %896 = vmatpush3.xpose.msk.msra.mxu1 %vm419_vm3, %v418_v11 }
 0x177   : > { %900 = vmatprep.subr.mxu1 %v1168_v2 }
 0x179   : > { %898 = vmatmul.mubr.msk.f32.vlgmr.msra.gmra.mxu1 %vm419_vm3, %v415_v12 }
 0x17a   : > { %902 = vmatprep.mubr.msk.f32.mxu1 %vm1169_vm1, %v1168_v2 }
 0x239   : > { %v491_v13 = vpop.f32.mrf.mxu1 }
 0x23a   : > { %v495_v14 = vsel %vm419_vm3, %v491_v13, -inf }
 0x23b   : > { %496 = vmax.xlane.f32.xlu0 %v495_v14  ;;  %v899_v15 = vpop.f32.mrf.mxu1 }
 0x2c4   : > { %v497_v16 = vpop.xlane.xlu0 %496 }
 0x2c5   : > { %v498_v17 = vsub.f32 %v491_v13, %v497_v16 }
 0x2c7   : > { %v499_v18 = vmul.f32 1.442695, %v498_v17 }
 0x2c9   : > { %1015 = vpow2.f32 %v499_v18 }
 0x2d6   : > { %v1016_v19 = vpop.eup %1015 }
 0x2d7   : > { %v501_v20 = vsel %vm419_vm3, %v1016_v19, 0.0 }
 0x2d8   : > { %502 = vadd.xlane.f32.xlu1 %v501_v20 }
 0x2e9   : > { %507 = vrot.lane.b32.xlu1 %v412_v9, %s1171_s21 }
 0x361   : > { %v503_v22 = vpop.xlane.xlu1 %502 }
 0x362   : > { %1017 = vrcp.f32 %v503_v22 }
 0x365   : > { %v508_v23 = vpop.permute.xlu1 %507 }
 0x366   : > { %901 = vmatpush3.msra.mxu1 %v508_v23 }
 0x36f   : > { %v1018_v24 = vpop.eup %1017 }
 0x370   : > { %v505_v25 = vmul.f32 %v1018_v24, %v1016_v19 }
 0x372   : > { %506 = vst.msk [vmem:[%s306_s8] sm:$0xff] %vm419_vm3, %v505_v25  ;;  %903 = vmatmul.mubr.msk.f32.vlgmr.msra.gmra.mxu1 %vm419_vm3, %v505_v25 }
 0x432   : > { %v579_v26 = vpop.f32.mrf.mxu1 }
 0x433   : > { %908 = vmatmul.mubr.msk.f32.vlgmr.msra.gmra.mxu0 %vm419_vm3, %v579_v26 }
 0x434   : > { %v904_v27 = vpop.f32.mrf.mxu1 }
 0x4f2   : > { %663 = sbr.rel (%p863_p8) target bundleno = 1281 (0x501), region = 48 }
 0x4f3   : > { %v654_v29 = vpop.f32.mrf.mxu0 }
 0x4f4   : > { %v658_v30 = vadd.f32 %v654_v29, %v583_v28 }
 0x4f5   : > { %v909_v31 = vpop.f32.mrf.mxu0 }
 0x4f6   : > { %659 = vst.msk [vmem:[#allocation2] sm:$0xff] %vm341_vm2, %v658_v30 }
 0x4f7   : > { %v864_v33 = vld [vmem:[%s1476_s4] ss:$0 sm:$0xff] }
 0x4fd   : > { %v664_v32 = vld [vmem:[#allocation2] sm:$0xff] }
 0x4fe   : > { %v672_v34 = vadd.f32 %v864_v33, %v664_v32 }
 0x500   : > { %673 = vst.msk [vmem:[%s299_s17] sm:$0xff] %vm341_vm2, %v672_v34 }
 0x501 PF: > { %s867_s30 = sshll.u32 %s1153_s28, 7  ;;  %s693_s18 = sshll.u32 %s299_s17, 4  ;;  %s694_s18 = int_to_ptr.vmem [resolvable:$true] %s693_s18 }
 0x502   : > { %s691_s11 = scalar_lea.hbm %s1477_s5, %s867_s30  ;;  %s1517_s9 = sand.u32 1, %s1141_s25  }
 0x503   : > { %s675_s12 = scalar_lea.sflag [#allocation4], %s1517_s9  ;;  %s1019_s13 = scalar_lea.vmem %s694_s18, 128 }
 0x504   : > { %p1020_p9 = scmp.ne.s32.totalorder %s694_s18, %s1019_s13  ;;  %s1172_s19 = smov [#allocation3]  }
 0x505   : > { %s1023_s20 = sshll.u32 %s1172_s19, 4  ;;  %s1024_s20 = int_to_ptr.vmem [resolvable:$false] %s1023_s20 }
 0x506   : > { %p1021_p10 = pnand %p1020_p9, %p1280_p3  ;;  %s1025_s23 = scalar_lea.vmem %s1024_s20, 256 }
 0x507   : > { %p1026_p0 = scmp.lt.s32.totalorder %s694_s18, %s1024_s20  ;;  %p1027_p1 = scmp.lt.s32.totalorder %s1025_s23, %s1019_s13 }
 0x508   : > { %p1022_p11 = pneg %p1021_p10 }
 0x509   : > { %p1028_p4 = por %p1027_p1, %p1026_p0 }
 0x50b   : > { %p1029_p2 = pnand %p1028_p4, %p1022_p11 }
 0x50d   : > { %1032 = shalt.err (!%p1029_p2)
}
 0x50e   : > { %s1033_s24 = scalar_lea.hbm %s691_s11, 128  ;;  %s1037_s26 = scalar_lea.hbm %s1477_s5, 256 }
 0x50f   : > { %p1034_p5 = scmp.ne.s32.totalorder %s691_s11, %s1033_s24  ;;  %p1038_p9 = scmp.lt.s32.totalorder %s691_s11, %s1477_s5 }
 0x510   : > { %p1039_p10 = scmp.lt.s32.totalorder %s1037_s26, %s1033_s24 }
 0x511   : > { %p1035_p6 = pnand %p1034_p5, %p1280_p3 }
 0x512   : > { %p1040_p13 = por %p1039_p10, %p1038_p9 }
 0x513   : > { %p1036_p8 = pneg %p1035_p6 }
 0x515   : > { %p1041_p7 = pnand %p1040_p13, %p1036_p8 }
 0x517   : > { %1044 = shalt.err (!%p1041_p7)
}
 0x518   : > { %910 = dma.vmem_to_hbm [thread:$0]  (%p1280_p3), %s694_s18, 128, %s691_s11, %s675_s12  }
 0x519   : > { %s868_s30 = sshll.u32 %s1153_s28, 2  ;;  %s708_s7 = sshll.u32 %s306_s8, 4  ;;  %s709_s7 = int_to_ptr.vmem [resolvable:$true] %s708_s7 }
 0x51a   : > { %s704_s10 = sadd.s32 %s1149_s27, %s868_s30  ;;  %s1519_s20 = sld [smem:[#allocation23_spill]] }
 0x51b   : > { %s869_s9 = sshll.u32 %s704_s10, 7  ;;  %s1520_s24 = sand.u32 1, %s1129_s22  }
 0x51c   : > { %s680_s15 = scalar_lea.sflag [#allocation6], %s1520_s24  ;;  %s1045_s17 = scalar_lea.vmem %s709_s7, 128 }
 0x51d   : > { %p1046_p7 = scmp.ne.s32.totalorder %s709_s7, %s1045_s17  ;;  %s1173_s14 = smov [#allocation5]  }
 0x51e   : > { %s1049_s26 = sshll.u32 %s1173_s14, 4  ;;  %s1050_s26 = int_to_ptr.vmem [resolvable:$false] %s1049_s26 }
 0x51f   : > { %p1047_p13 = pnand %p1046_p7, %p1309_p12  ;;  %s1051_s28 = scalar_lea.vmem %s1050_s26, 256 }
 0x520   : > { %s706_s23 = scalar_lea.hbm %s1519_s20, %s869_s9  ;;  %p1052_p3 = scmp.lt.s32.totalorder %s709_s7, %s1050_s26 }
 0x521   : > { %p1048_p11 = pneg %p1047_p13  ;;  %p1053_p0 = scmp.lt.s32.totalorder %s1051_s28, %s1045_s17 }
 0x523   : > { %p1054_p1 = por %p1053_p0, %p1052_p3 }
 0x525   : > { %p1055_p4 = pnand %p1054_p1, %p1048_p11 }
 0x527   : > { %1058 = shalt.err (!%p1055_p4)
}
 0x528   : > { %s1059_s27 = scalar_lea.hbm %s706_s23, 128  ;;  %s1063_s11 = scalar_lea.hbm %s1519_s20, 1024 }
 0x529   : > { %p1060_p2 = scmp.ne.s32.totalorder %s706_s23, %s1059_s27  ;;  %p1064_p8 = scmp.lt.s32.totalorder %s706_s23, %s1519_s20 }
 0x52a   : > { %p1065_p9 = scmp.lt.s32.totalorder %s1063_s11, %s1059_s27 }
 0x52b   : > { %p1061_p5 = pnand %p1060_p2, %p1309_p12 }
 0x52c   : > { %p1066_p10 = por %p1065_p9, %p1064_p8 }
 0x52d   : > { %p1062_p6 = pneg %p1061_p5 }
 0x52f   : > { %p1067_p7 = pnand %p1066_p10, %p1062_p6 }
 0x531   : > { %1070 = shalt.err (!%p1067_p7)
}
 0x532   : > { %911 = dma.vmem_to_hbm [thread:$0]  (%p1309_p12), %s709_s7, 128, %s706_s23, %s680_s15  }
 0x533 PF: > { %s1521_s21 = sld [smem:[#allocation15_spill]] }
 0x534   : > { %s1522_s6 = sld [smem:[#allocation11_spill]] }
 0x535   : > { %s1523_s30 = sld [smem:[#allocation18_spill]] }
 0x539   : > { %p921_p13 = scmp.ge.s32.totalorder %s1521_s21, 2 }
 0x53a   : > { %s720_s10 = sand.u32 1, %s1522_s6  }
 0x53b   : > { %p1524_p11 = scmp.ne.s32.totalorder %s1523_s30, 0  ;;  %s721_s9 = scalar_lea.sflag [#allocation4], %s720_s10 }
 0x53d   : > { %p915_p3 = pnand %p921_p13, %p1524_p11 }
 0x53f   : > { %p916_p0 = pneg %p915_p3 }
 0x541   : > { %1116 = dma.done.wait (%p916_p0), %s721_s9, 128  }
 0x542   : > { %1118 = vsyncadd (%p916_p0), %s721_s9, 4294967168  ;;  %s1525_s13 = sld [smem:[#allocation9_spill]] }
 0x543   : > { %s1526_s19 = sld [smem:[#allocation22_spill]] }
 0x548   : > { %s729_s24 = sand.u32 1, %s1525_s13  }
 0x549   : > { %p1527_p1 = scmp.ne.s32.totalorder %s1526_s19, 0  ;;  %s730_s29 = scalar_lea.sflag [#allocation6], %s729_s24 }
 0x54b   : > { %p918_p4 = pnand %p921_p13, %p1527_p1 }
 0x54d   : > { %p919_p2 = pneg %p918_p4 }
 0x54f   : > { %1120 = dma.done.wait (%p919_p2), %s730_s29, 128  }
 0x550   : > { %1122 = vsyncadd (%p919_p2), %s730_s29, 4294967168  ;;  %s23_s7 = sadd.s32 1, %s1521_s21   ;;  %s1528_s23 = sld [smem:[#allocation10_spill]] }
 0x551   : > { %p20_p12 = scmp.ge.s32.totalorder %s23_s7, 10   ;;  %s1529_s15 = sld [smem:[#allocation21_spill]] }
 0x552   : > { %s1530_s17 = sld [smem:[#allocation12_spill]]  ;;  %s1536_s21 = smov %s1129_s22 }
 0x553   : > { %s1531_s26 = sld [smem:[#allocation20_spill]]  ;;  %s1539_s24 = smov %s1141_s25 }
 0x554   : > { %s1532_s27 = sld [smem:[#allocation13_spill]]  ;;  %22 = sbr.rel (!%p20_p12) target bundleno = 11 (0xb), region = 109 }
 0x555   : > { %s1533_s28 = sld [smem:[#allocation14_spill]] }
 0x556   : > { %s1534_s29 = sld [smem:[#allocation16_spill]]  ;;  %s1537_s22 = smov %s1528_s23 }
 0x557   : > { %s1535_s30 = sld [smem:[#allocation17_spill]]  ;;  %s1538_s23 = smov %s1529_s15 }
 0x558   : > { %s1540_s25 = smov %s1530_s17 }
 0x559   :  { %735 = vsyncpa [#allocation4], 1 }
 0x55a   :  { %737 = vsyncpa [#allocation4 + $0x1], 1 }
 0x55b   :  { %738 = vsyncpa [#allocation6], 1 }
 0x55c   :  { %740 = vsyncpa [#allocation6 + $0x1], 1 }

// kernel: tpu_custom_call.1
= control target key start
LH: loop header
LB: loop body
LE: loop exit
PB: predicated region body
PF: predicated region fallthrough
CT: control target
= control target key end

     0   :  { %s1472_s0 = inlined_call_operand.vmem [shape: f32[2,8,32], index: 0, kind: input, shape index: {}]   ;;  %s1473_s1 = inlined_call_operand.vmem [shape: f32[4,32,24], index: 1, kind: input, shape index: {}]   ;;  %s1474_s2 = inlined_call_operand.vmem [shape: f32[4,1,24], index: 2, kind: input, shape index: {}]   ;;  %s1475_s3 = inlined_call_operand.vmem [shape: f32[4,8,32], index: 3, kind: input, shape index: {}]   ;;  %s1476_s4 = inlined_call_operand.vmem [shape: f32[1,32], index: 4, kind: input, shape index: {}]   ;;  %s1477_s5 = inlined_call_operand.hbm [shape: f32[2,8,32], index: 5, kind: output, shape index: {0}]   ;;  %s1478_s6 = inlined_call_operand.hbm [shape: f32[2,4,8,8], index: 6, kind: output, shape index: {1}]  }
   0x1   :  { %1496 = sst [smem:[#allocation23_spill]] %s1478_s6 }
   0x2   :  { %12 = vsyncpa [#allocation4], 0 }
   0x3   :  { %14 = vsyncpa [#allocation4 + $0x1], 0 }
   0x4   :  { %15 = vsyncpa [#allocation6], 0 }
   0x5   :  { %17 = vsyncpa [#allocation6 + $0x1], 0  ;;  %s1209_s21 = smov 0   ;;  %s1211_s22 = smov 0  }
   0x6   :  { %s1213_s23 = smov 0   ;;  %s1215_s24 = smov 0  }
   0x7   :  { %s1217_s25 = smov 0   ;;  %s1219_s26 = smov 0  }
   0x8   :  { %s1221_s27 = smov 0   ;;  %s1223_s28 = smov 0  }
   0x9   :  { %s1225_s29 = smov 0   ;;  %s1227_s30 = smov 0  }
   0xa   :  { %s1229_s7 = smov 0  }
   0xb LB: > { %1497 = sst [smem:[#allocation9_spill]] %s1125_s21  ;;  %s845_s8 = sadd.s32 4294967295, %s1165_s7   ;;  %s1165_s7 = sphi %s1229_s7, %s23_s7   ;;  %s1161_s30 = sphi %s1227_s30, %s1535_s30   ;;  %s1157_s29 = sphi %s1225_s29, %s1534_s29   ;;  %s1153_s28 = sphi %s1223_s28, %s1533_s28   ;;  %s1149_s27 = sphi %s1221_s27, %s1532_s27   ;;  %s1145_s26 = sphi %s1219_s26, %s1531_s26   ;;  %s1141_s25 = sphi %s1217_s25, %s1540_s25   ;;  %s1137_s24 = sphi %s1215_s24, %s1539_s24   ;;  %s1133_s23 = sphi %s1213_s23, %s1538_s23   ;;  %s1129_s22 = sphi %s1211_s22, %s1537_s22   ;;  %s1125_s21 = sphi %s1209_s21, %s1536_s21  }
   0xc   : > { %1498 = sst [smem:[#allocation10_spill]] %s1133_s23  ;;  %s846_s9 = sadd.s32 4294967294, %s1165_s7  }
   0xd   : > { %1499 = sst [smem:[#allocation11_spill]] %s1137_s24  ;;  %s32_s10 = sadd.s32 1, %s1157_s29 }
   0xe   : > { %1500 = sst [smem:[#allocation12_spill]] %s1145_s26  ;;  %s35_s11 = sadd.s32 1, %s1161_s30 }
   0xf   : > { %1501 = sst [smem:[#allocation13_spill]] %s1157_s29  ;;  %p33_p0 = scmp.ge.s32.totalorder %s32_s10, 4 }
  0x10   : > { %1502 = sst [smem:[#allocation14_spill]] %s1161_s30  ;;  %s167_s12 = sadd.s32 1, %s1145_s26 }
  0x11   : > { %1503 = sst [smem:[#allocation15_spill]] %s1165_s7  ;;  %p177_p1 = scmp.ne.s32.totalorder %s1145_s26, %s1141_s25 }
  0x12   : > { %p1271_p2 = scmp.eq.s32.totalorder %s845_s8, 7  ;;  %s1542_s10 = smov (%p33_p0, %s32_s10), 0 }
  0x13   : > { %1505 = sst [smem:[#allocation16_spill]] %s1542_s10  ;;  %s1544_s11 = smov (!%p33_p0, %s35_s11), %s1161_s30 }
  0x14   : > { %p1280_p3 = por %p1271_p2, %p177_p1  ;;  %p183_p4 = scmp.ne.s32.totalorder %s1141_s25, %s1137_s24 }
  0x15   : > { %p37_p5 = scmp.ge.s32.totalorder %s1544_s11, 2  ;;  %p1286_p6 = scmp.eq.s32.totalorder %s846_s9, 7 }
  0x16   : > { %s191_s16 = ssub.s32 %s1157_s29, %s1542_s10  ;;  %s195_s17 = sadd.s32 1, %s1133_s23 }
  0x17   : > { %s1546_s11 = smov (%p37_p5, %s1544_s11), 0  ;;  %p1297_p7 = por %p1286_p6, %p183_p4 }
  0x18   : > { %1508 = sst [smem:[#allocation17_spill]] %s1546_s11  ;;  %p205_p8 = scmp.ne.s32.totalorder %s1133_s23, %s1129_s22 }
  0x19   : > { %s1509_s18 = scalar_select %p1297_p7, 1, 0 }
  0x1a   : > { %s164_s19 = ssub.s32 %s1161_s30, %s1546_s11  ;;  %p211_p9 = scmp.ne.s32.totalorder %s1129_s22, %s1125_s21 }
  0x1b   : > { %1510 = sst [smem:[#allocation18_spill]] %s1509_s18  ;;  %p165_p10 = scmp.eq.s32.totalorder %s164_s19, 0 }
  0x1c   : > { %s192_s20 = sor.u32 %s191_s16, %s164_s19  ;;  %p1309_p12 = por %p205_p8, %p1271_p2 }
  0x1d   : > { %p193_p11 = scmp.eq.s32.totalorder %s192_s20, 0  ;;  %p1321_p13 = por %p211_p9, %p1286_p6 }
  0x1e   : > { %s1511_s8 = scalar_select %p1309_p12, 1, 0 }
  0x1f   : > { %s1314_s9 = scalar_select %p165_p10, %s1145_s26, %s167_s12  }
  0x20   : > { %1512 = sst [smem:[#allocation19_spill]] %s1511_s8  ;;  %p849_p0 = scmp.ge.s32.totalorder %s1165_s7, 1 }
  0x21   : > { %1513 = sst [smem:[#allocation20_spill]] %s1314_s9  ;;  %p261_p1 = scmp.lt.s32.totalorder %s1165_s7, 9 }
  0x22   : > { %s1317_s10 = scalar_select %p193_p11, %s1133_s23, %s195_s17  }
  0x23   : > { %s1515_s29 = scalar_select %p1321_p13, 1, 0 }
  0x24   : > { %1514 = sst [smem:[#allocation21_spill]] %s1317_s10  ;;  %p262_p4 = pnand %p849_p0, %p261_p1 }
  0x25   : > { %1516 = sst [smem:[#allocation22_spill]] %s1515_s29  ;;  %s1483_s12 = sand.u32 (!%p262_p4), 1, %s1141_s25  }
  0x26   : > { %265 = sbr.rel (%p262_p4) target bundleno = 1331 (0x533), region = 40  ;;  %s1485_s13 = sand.u32 (!%p262_p4), 1, %s1129_s22  }
  0x27   : > { %s1331_s15 = sshll.u32 (!%p262_p4), %s1483_s12, 3  ;;  %s1335_s16 = sshll.u32 (!%p262_p4), %s1485_s13, 3 }
  0x28   : > { %p307_p2 = scmp.lt.s32.totalorder (!%p262_p4), %s1153_s28, 1  ;;  %p311_p5 = scmp.lt.s32.totalorder (!%p262_p4), %s1149_s27, 3 }
  0x29   : > { %s306_s8 = scalar_lea.vmem (!%p262_p4), [#allocation5], %s1335_s16  ;;  %p856_p6 = scmp.ne.s32.totalorder (!%p262_p4), %s1149_s27, 0 }
  0x2b   : > { %s308_s17 = scalar_select %p307_p2, %s1153_s28, 1 }
  0x2c   : > { %s1341_s19 = scalar_select %p311_p5, %s1149_s27, 3 }
  0x2d   : > { %s852_s20 = sshll.u32 %s308_s17, 3  ;;  %s299_s17 = scalar_lea.vmem [#allocation3], %s1331_s15 }
  0x2e   : > { %s310_s9 = scalar_lea.vmem %s1472_s0, %s852_s20  ;;  %s872_s12 = sshll.u32 %s1341_s19, 5 }
  0x2f   : > { %s315_s13 = scalar_lea.vmem %s1473_s1, %s872_s12  ;;  %s318_s21 = scalar_lea.vmem %s1474_s2, %s1341_s19 }
  0x30   : > { %s855_s18 = sshll.u32 %s1341_s19, 3  ;;  %326 = sbr.rel (%p856_p6) target bundleno = 55 (0x37), region = 44 }
  0x31   : > { %s1358_s6 = scalar_lea.vmem %s1475_s3, %s855_s18 }
  0x35   : > { %vm327_vm0 = vcmask 261120   ;;  %v1167_v0 = vmov 0.0  }
  0x36   : > { %328 = vst.msk [vmem:[#allocation2] sm:$0xff] %vm327_vm0, %v1167_v0 }
  0x37 PF: > { %v333_v1 = vld [vmem:[%s315_s13 + $0x18] sm:$0xff]  ;;  %v1168_v2 = vmov 0.0   ;;  %v332_v3 = vld [vmem:[%s315_s13 + $0x10] sm:$0xff]  ;;  %vm1169_vm1 = vmmov 0   ;;  %v331_v4 = vld [vmem:[%s315_s13 + $0x8] sm:$0xff]  ;;  %vm341_vm2 = vcmask 261120  }
  0x38   : > { %884 = vmatprep.subr.mxu0 %v1168_v2  ;;  %892 = vmatprep.mubr.msk.f32.mxu0 %vm1169_vm1, %v1168_v2  ;;  %v330_v5 = vld [vmem:[%s315_s13] sm:$0xff]  ;;  %s1170_s26 = smov 120   ;;  %vm419_vm3 = vcmask 64512   ;;  %p863_p8 = scmp.ne.s32.totalorder %s1149_s27, 3 }
  0x39   : > { %885 = vmatpush3.msra.mxu0 %v333_v1  ;;  %895 = vmatprep.subr.mxu1 %v1168_v2  ;;  %v329_v6 = vld [vmem:[%s310_s9] sm:$0xff] }
  0x3a   : > { %886 = vmatprep.subr.mxu0 %v1168_v2  ;;  %897 = vmatprep.mubr.msk.f32.mxu1 %vm1169_vm1, %v1168_v2  ;;  %v857_v7 = vld [vmem:[%s318_s21] ss:$0 sm:$0xff]  ;;  %s1171_s21 = smov 112  }
  0x3b   : > { %887 = vmatpush3.msra.mxu0 %v332_v3  ;;  %v584_v21 = vld [vmem:[%s1358_s6] sm:$0xff] }
  0x3c   : > { %888 = vmatprep.subr.mxu0 %v1168_v2 }
  0x3d   : > { %889 = vmatpush3.msra.mxu0 %v331_v4  ;;  %v583_v28 = vld [vmem:[#allocation2] sm:$0xff] }
  0x3e   : > { %890 = vmatprep.subr.mxu0 %v1168_v2 }
  0x3f   : > { %891 = vmatpush3.msra.mxu0 %v330_v5 }
  0x40   : > { %893 = vmatmul.mubr.msk.f32.vlgmr.msra.gmra.mxu0 %vm341_vm2, %v329_v6  ;;  %905 = vmatprep.subr.mxu0 %v1168_v2 }
  0x41   : > { %907 = vmatprep.mubr.msk.f32.mxu0 %vm1169_vm1, %v1168_v2  ;;  %906 = vmatpush3.msra.mxu0 %v584_v21 }
 0x100   : > { %v411_v8 = vpop.f32.mrf.mxu0 }
 0x101   : > { %v412_v9 = vadd.f32 %v857_v7, %v411_v8 }
 0x102   : > { %v894_v10 = vpop.f32.mrf.mxu0 }
 0x103   : > { %417 = vrot.lane.b32.xlu0 %v412_v9, %s1170_s26  ;;  %v415_v12 = vmul.f32 0.35355338, %v412_v9 }
 0x175   : > { %v418_v11 = vpop.permute.xlu0 %417 }
 0x176   : > { %896 = vmatpush3.xpose.msk.msra.mxu1 %vm419_vm3, %v418_v11 }
 0x177   : > { %900 = vmatprep.subr.mxu1 %v1168_v2 }
 0x179   : > { %898 = vmatmul.mubr.msk.f32.vlgmr.msra.gmra.mxu1 %vm419_vm3, %v415_v12 }
 0x17a   : > { %902 = vmatprep.mubr.msk.f32.mxu1 %vm1169_vm1, %v1168_v2 }
 0x239   : > { %v491_v13 = vpop.f32.mrf.mxu1 }
 0x23a   : > { %v495_v14 = vsel %vm419_vm3, %v491_v13, -inf }
 0x23b   : > { %496 = vmax.xlane.f32.xlu0 %v495_v14  ;;  %v899_v15 = vpop.f32.mrf.mxu1 }
 0x2c4   : > { %v497_v16 = vpop.xlane.xlu0 %496 }
 0x2c5   : > { %v498_v17 = vsub.f32 %v491_v13, %v497_v16 }
 0x2c7   : > { %v499_v18 = vmul.f32 1.442695, %v498_v17 }
 0x2c9   : > { %1015 = vpow2.f32 %v499_v18 }
 0x2d6   : > { %v1016_v19 = vpop.eup %1015 }
 0x2d7   : > { %v501_v20 = vsel %vm419_vm3, %v1016_v19, 0.0 }
 0x2d8   : > { %502 = vadd.xlane.f32.xlu1 %v501_v20 }
 0x2e9   : > { %507 = vrot.lane.b32.xlu1 %v412_v9, %s1171_s21 }
 0x361   : > { %v503_v22 = vpop.xlane.xlu1 %502 }
 0x362   : > { %1017 = vrcp.f32 %v503_v22 }
 0x365   : > { %v508_v23 = vpop.permute.xlu1 %507 }
 0x366   : > { %901 = vmatpush3.msra.mxu1 %v508_v23 }
 0x36f   : > { %v1018_v24 = vpop.eup %1017 }
 0x370   : > { %v505_v25 = vmul.f32 %v1018_v24, %v1016_v19 }
 0x372   : > { %506 = vst.msk [vmem:[%s306_s8] sm:$0xff] %vm419_vm3, %v505_v25  ;;  %903 = vmatmul.mubr.msk.f32.vlgmr.msra.gmra.mxu1 %vm419_vm3, %v505_v25 }
 0x432   : > { %v579_v26 = vpop.f32.mrf.mxu1 }
 0x433   : > { %908 = vmatmul.mubr.msk.f32.vlgmr.msra.gmra.mxu0 %vm419_vm3, %v579_v26 }
 0x434   : > { %v904_v27 = vpop.f32.mrf.mxu1 }
 0x4f2   : > { %663 = sbr.rel (%p863_p8) target bundleno = 1281 (0x501), region = 48 }
 0x4f3   : > { %v654_v29 = vpop.f32.mrf.mxu0 }
 0x4f4   : > { %v658_v30 = vadd.f32 %v654_v29, %v583_v28 }
 0x4f5   : > { %v909_v31 = vpop.f32.mrf.mxu0 }
 0x4f6   : > { %659 = vst.msk [vmem:[#allocation2] sm:$0xff] %vm341_vm2, %v658_v30 }
 0x4f7   : > { %v864_v33 = vld [vmem:[%s1476_s4] ss:$0 sm:$0xff] }
 0x4fd   : > { %v664_v32 = vld [vmem:[#allocation2] sm:$0xff] }
 0x4fe   : > { %v672_v34 = vadd.f32 %v864_v33, %v664_v32 }
 0x500   : > { %673 = vst.msk [vmem:[%s299_s17] sm:$0xff] %vm341_vm2, %v672_v34 }
 0x501 PF: > { %s867_s30 = sshll.u32 %s1153_s28, 7  ;;  %s693_s18 = sshll.u32 %s299_s17, 4  ;;  %s694_s18 = int_to_ptr.vmem [resolvable:$true] %s693_s18 }
 0x502   : > { %s691_s11 = scalar_lea.hbm %s1477_s5, %s867_s30  ;;  %s1517_s9 = sand.u32 1, %s1141_s25  }
 0x503   : > { %s675_s12 = scalar_lea.sflag [#allocation4], %s1517_s9  ;;  %s1019_s13 = scalar_lea.vmem %s694_s18, 128 }
 0x504   : > { %p1020_p9 = scmp.ne.s32.totalorder %s694_s18, %s1019_s13  ;;  %s1172_s19 = smov [#allocation3]  }
 0x505   : > { %s1023_s20 = sshll.u32 %s1172_s19, 4  ;;  %s1024_s20 = int_to_ptr.vmem [resolvable:$false] %s1023_s20 }
 0x506   : > { %p1021_p10 = pnand %p1020_p9, %p1280_p3  ;;  %s1025_s23 = scalar_lea.vmem %s1024_s20, 256 }
 0x507   : > { %p1026_p0 = scmp.lt.s32.totalorder %s694_s18, %s1024_s20  ;;  %p1027_p1 = scmp.lt.s32.totalorder %s1025_s23, %s1019_s13 }
 0x508   : > { %p1022_p11 = pneg %p1021_p10 }
 0x509   : > { %p1028_p4 = por %p1027_p1, %p1026_p0 }
 0x50b   : > { %p1029_p2 = pnand %p1028_p4, %p1022_p11 }
 0x50d   : > { %1032 = shalt.err (!%p1029_p2)
}
 0x50e   : > { %s1033_s24 = scalar_lea.hbm %s691_s11, 128  ;;  %s1037_s26 = scalar_lea.hbm %s1477_s5, 256 }
 0x50f   : > { %p1034_p5 = scmp.ne.s32.totalorder %s691_s11, %s1033_s24  ;;  %p1038_p9 = scmp.lt.s32.totalorder %s691_s11, %s1477_s5 }
 0x510   : > { %p1039_p10 = scmp.lt.s32.totalorder %s1037_s26, %s1033_s24 }
 0x511   : > { %p1035_p6 = pnand %p1034_p5, %p1280_p3 }
 0x512   : > { %p1040_p13 = por %p1039_p10, %p1038_p9 }
 0x513   : > { %p1036_p8 = pneg %p1035_p6 }
 0x515   : > { %p1041_p7 = pnand %p1040_p13, %p1036_p8 }
 0x517   : > { %1044 = shalt.err (!%p1041_p7)
}
 0x518   : > { %910 = dma.vmem_to_hbm [thread:$0]  (%p1280_p3), %s694_s18, 128, %s691_s11, %s675_s12  }
 0x519   : > { %s868_s30 = sshll.u32 %s1153_s28, 2  ;;  %s708_s7 = sshll.u32 %s306_s8, 4  ;;  %s709_s7 = int_to_ptr.vmem [resolvable:$true] %s708_s7 }
 0x51a   : > { %s704_s10 = sadd.s32 %s1149_s27, %s868_s30  ;;  %s1519_s20 = sld [smem:[#allocation23_spill]] }
 0x51b   : > { %s869_s9 = sshll.u32 %s704_s10, 7  ;;  %s1520_s24 = sand.u32 1, %s1129_s22  }
 0x51c   : > { %s680_s15 = scalar_lea.sflag [#allocation6], %s1520_s24  ;;  %s1045_s17 = scalar_lea.vmem %s709_s7, 128 }
 0x51d   : > { %p1046_p7 = scmp.ne.s32.totalorder %s709_s7, %s1045_s17  ;;  %s1173_s14 = smov [#allocation5]  }
 0x51e   : > { %s1049_s26 = sshll.u32 %s1173_s14, 4  ;;  %s1050_s26 = int_to_ptr.vmem [resolvable:$false] %s1049_s26 }
 0x51f   : > { %p1047_p13 = pnand %p1046_p7, %p1309_p12  ;;  %s1051_s28 = scalar_lea.vmem %s1050_s26, 256 }
 0x520   : > { %s706_s23 = scalar_lea.hbm %s1519_s20, %s869_s9  ;;  %p1052_p3 = scmp.lt.s32.totalorder %s709_s7, %s1050_s26 }
 0x521   : > { %p1048_p11 = pneg %p1047_p13  ;;  %p1053_p0 = scmp.lt.s32.totalorder %s1051_s28, %s1045_s17 }
 0x523   : > { %p1054_p1 = por %p1053_p0, %p1052_p3 }
 0x525   : > { %p1055_p4 = pnand %p1054_p1, %p1048_p11 }
 0x527   : > { %1058 = shalt.err (!%p1055_p4)
}
 0x528   : > { %s1059_s27 = scalar_lea.hbm %s706_s23, 128  ;;  %s1063_s11 = scalar_lea.hbm %s1519_s20, 1024 }
 0x529   : > { %p1060_p2 = scmp.ne.s32.totalorder %s706_s23, %s1059_s27  ;;  %p1064_p8 = scmp.lt.s32.totalorder %s706_s23, %s1519_s20 }
 0x52a   : > { %p1065_p9 = scmp.lt.s32.totalorder %s1063_s11, %s1059_s27 }
 0x52b   : > { %p1061_p5 = pnand %p1060_p2, %p1309_p12 }
 0x52c   : > { %p1066_p10 = por %p1065_p9, %p1064_p8 }
 0x52d   : > { %p1062_p6 = pneg %p1061_p5 }
 0x52f   : > { %p1067_p7 = pnand %p1066_p10, %p1062_p6 }
 0x531   : > { %1070 = shalt.err (!%p1067_p7)
}
 0x532   : > { %911 = dma.vmem_to_hbm [thread:$0]  (%p1309_p12), %s709_s7, 128, %s706_s23, %s680_s15  }
 0x533 PF: > { %s1521_s21 = sld [smem:[#allocation15_spill]] }
 0x534   : > { %s1522_s6 = sld [smem:[#allocation11_spill]] }
 0x535   : > { %s1523_s30 = sld [smem:[#allocation18_spill]] }
 0x539   : > { %p921_p13 = scmp.ge.s32.totalorder %s1521_s21, 2 }
 0x53a   : > { %s720_s10 = sand.u32 1, %s1522_s6  }
 0x53b   : > { %p1524_p11 = scmp.ne.s32.totalorder %s1523_s30, 0  ;;  %s721_s9 = scalar_lea.sflag [#allocation4], %s720_s10 }
 0x53d   : > { %p915_p3 = pnand %p921_p13, %p1524_p11 }
 0x53f   : > { %p916_p0 = pneg %p915_p3 }
 0x541   : > { %1116 = dma.done.wait (%p916_p0), %s721_s9, 128  }
 0x542   : > { %1118 = vsyncadd (%p916_p0), %s721_s9, 4294967168  ;;  %s1525_s13 = sld [smem:[#allocation9_spill]] }
 0x543   : > { %s1526_s19 = sld [smem:[#allocation22_spill]] }
 0x548   : > { %s729_s24 = sand.u32 1, %s1525_s13  }
 0x549   : > { %p1527_p1 = scmp.ne.s32.totalorder %s1526_s19, 0  ;;  %s730_s29 = scalar_lea.sflag [#allocation6], %s729_s24 }
 0x54b   : > { %p918_p4 = pnand %p921_p13, %p1527_p1 }
 0x54d   : > { %p919_p2 = pneg %p918_p4 }
 0x54f   : > { %1120 = dma.done.wait (%p919_p2), %s730_s29, 128  }
 0x550   : > { %1122 = vsyncadd (%p919_p2), %s730_s29, 4294967168  ;;  %s23_s7 = sadd.s32 1, %s1521_s21   ;;  %s1528_s23 = sld [smem:[#allocation10_spill]] }
 0x551   : > { %p20_p12 = scmp.ge.s32.totalorder %s23_s7, 10   ;;  %s1529_s15 = sld [smem:[#allocation21_spill]] }
 0x552   : > { %s1530_s17 = sld [smem:[#allocation12_spill]]  ;;  %s1536_s21 = smov %s1129_s22 }
 0x553   : > { %s1531_s26 = sld [smem:[#allocation20_spill]]  ;;  %s1539_s24 = smov %s1141_s25 }
 0x554   : > { %s1532_s27 = sld [smem:[#allocation13_spill]]  ;;  %22 = sbr.rel (!%p20_p12) target bundleno = 11 (0xb), region = 109 }
 0x555   : > { %s1533_s28 = sld [smem:[#allocation14_spill]] }
 0x556   : > { %s1534_s29 = sld [smem:[#allocation16_spill]]  ;;  %s1537_s22 = smov %s1528_s23 }
 0x557   : > { %s1535_s30 = sld [smem:[#allocation17_spill]]  ;;  %s1538_s23 = smov %s1529_s15 }
 0x558   : > { %s1540_s25 = smov %s1530_s17 }
 0x559   :  { %735 = vsyncpa [#allocation4], 1 }
 0x55a   :  { %737 = vsyncpa [#allocation4 + $0x1], 1 }
 0x55b   :  { %738 = vsyncpa [#allocation6], 1 }
 0x55c   :  { %740 = vsyncpa [#allocation6 + $0x1], 1 }

</bundles_post_ra>
